<compile_context>
chip_gen: v7x
topology: tpu7x:2x2x1
jax: 0.10.0
libtpu: 0.0.40
codegen_flags: <defaults>
</compile_context>

<pallas_src>
import math
from functools import partial

import jax
import jax.numpy as jnp
from jax.experimental import pallas as pl
from jax.experimental.pallas import tpu as pltpu


# ---------------------------------------------------------------------------
# Pallas kernel: one row-tile [M, H] of the flattened [B*S, H] input.
# ---------------------------------------------------------------------------
def _intermediate_kernel(x_ref, w_in_ref, b_in_ref, w_out_ref, b_out_ref,
                         gamma_ref, beta_ref, out_ref, *, eps):
    x = x_ref[...]                                                    # [M, H]

    # dense_in + ReLU   (bias [1, I] broadcasts over rows)
    h = jnp.dot(x, w_in_ref[...], preferred_element_type=jnp.float32)
    h = jnp.maximum(h + b_in_ref[...], 0.0)                           # [M, I]

    # dense_out
    h = jnp.dot(h, w_out_ref[...], preferred_element_type=jnp.float32)
    h = h + b_out_ref[...]                                            # [M, H]

    # dropout == identity (eval mode); residual + TF-style LayerNorm
    y = h + x
    mean = jnp.mean(y, axis=-1, keepdims=True)
    c = y - mean
    var = jnp.mean(c * c, axis=-1, keepdims=True)
    inv = jax.lax.rsqrt(var + eps)                                    # EUP slot
    out_ref[...] = (gamma_ref[...] * (c * inv) + beta_ref[...]).astype(out_ref.dtype)


# ---------------------------------------------------------------------------
# Wrapper
# ---------------------------------------------------------------------------
def intermediate_forward(x, params, *, eps=1e-12, block_m=None):
    orig_shape = x.shape
    H = orig_shape[-1]
    x2d = x.reshape(-1, H).astype(jnp.float32)          # lane-dense [B*S, H]
    N = x2d.shape[0]

    if block_m is None:
        # Largest row tile that fits comfortably in VMEM (<= 1024 rows) and is
        # a multiple of the 8-sublane granularity; small problems -> one step.
        block_m = min(1024, max(8, -(-N // 8) * 8))

    # Pad rows up to a multiple of block_m (pad rows are computed then dropped;
    # LayerNorm is per-row so padding cannot contaminate real rows).
    N_pad = -(-N // block_m) * block_m
    if N_pad != N:
        x2d = jnp.pad(x2d, ((0, N_pad - N), (0, 0)))
    grid = (N_pad // block_m,)

    row_spec = pl.BlockSpec((block_m, H), lambda i: (i, 0))

    def const_spec(arr):
        nd = arr.ndim
        return pl.BlockSpec(arr.shape, lambda i, _n=nd: (0,) * _n)

    out2d = pl.pallas_call(
        partial(_intermediate_kernel, eps=eps),
        grid=grid,
        in_specs=[row_spec,
                  const_spec(params["w_in"]), const_spec(params["b_in"]),
                  const_spec(params["w_out"]), const_spec(params["b_out"]),
                  const_spec(params["gamma"]), const_spec(params["beta"])],
        out_specs=row_spec,
        out_shape=jax.ShapeDtypeStruct((N_pad, H), jnp.float32),
        compiler_params=pltpu.CompilerParams(
            dimension_semantics=("parallel",),
            vmem_limit_bytes=64 << 20),
    )(x2d, params["w_in"], params["b_in"], params["w_out"], params["b_out"],
      params["gamma"], params["beta"])

    if N_pad != N:
        out2d = out2d[:N]
    return out2d.reshape(orig_shape)


# ---------------------------------------------------------------------------
# Pure-JAX reference (mirrors the PyTorch forward, eval-mode dropout).
# ---------------------------------------------------------------------------
def reference(x, params, eps=1e-12):
    h = x @ params["w_in"] + params["b_in"]
    h = jnp.maximum(h, 0.0)
    h = h @ params["w_out"] + params["b_out"]
    y = h + x
    u = y.mean(-1, keepdims=True)
    s = ((y - u) ** 2).mean(-1, keepdims=True)
    yn = (y - u) / jnp.sqrt(s + eps)
    return params["gamma"] * yn + params["beta"]


# ---------------------------------------------------------------------------
# Main
# ---------------------------------------------------------------------------
if __name__ == "__main__":
    B, S = 2, 8
    hidden_size, intermediate_size = 128, 512   # lane-dense (multiples of 128)

    root = jax.random.PRNGKey(0)
    k = jax.random.split(root, 8)

    def init_linear(kw, kb, d_in, d_out):
        bound = 1.0 / math.sqrt(d_in)
        w = jax.random.uniform(kw, (d_in, d_out), jnp.float32, -bound, bound)
        b = jax.random.uniform(kb, (1, d_out), jnp.float32, -bound, bound)
        return w, b

    params = {}
    params["w_in"], params["b_in"] = init_linear(k[0], k[1], hidden_size, intermediate_size)
    params["w_out"], params["b_out"] = init_linear(k[2], k[3], intermediate_size, hidden_size)
    # LayerNorm affine params (perturbed from ones/zeros so the affine path is tested).
    params["gamma"] = 1.0 + 0.1 * jax.random.normal(k[4], (1, hidden_size), jnp.float32)
    params["beta"] = 0.1 * jax.random.normal(k[5], (1, hidden_size), jnp.float32)

    x = jax.random.normal(k[6], (B, S, hidden_size), jnp.float32)

    out = intermediate_forward(x, params)
    jax.block_until_ready(out)

    ref = reference(x, params)
    assert jnp.allclose(out, ref, atol=1e-4, rtol=1e-4), float(jnp.max(jnp.abs(out - ref)))

    print("KERNEL_OK")
</pallas_src>

<mosaic_0001>
module attributes {stable_mosaic.version = 11 : i64} {
  func.func @_intermediate_kernel(%arg0: i32, %arg1: memref<16x128xf32, #tpu.memory_space<vmem>>, %arg2: memref<128x512xf32, #tpu.memory_space<vmem>>, %arg3: memref<1x512xf32, #tpu.memory_space<vmem>>, %arg4: memref<512x128xf32, #tpu.memory_space<vmem>>, %arg5: memref<1x128xf32, #tpu.memory_space<vmem>>, %arg6: memref<1x128xf32, #tpu.memory_space<vmem>>, %arg7: memref<1x128xf32, #tpu.memory_space<vmem>>, %arg8: memref<16x128xf32, #tpu.memory_space<vmem>>) attributes {dimension_semantics = [#tpu.dimension_semantics<parallel>], iteration_bounds = array<i64: 1>, scalar_prefetch = 0 : i64, scratch_operands = 0 : i64, tpu.core_type = #tpu.core_type<tc>, window_params = [{transform_indices = @transform_0, window_bounds = array<i64: 16, 128>}, {pipeline_mode = #tpu.pipeline_mode<synchronous>, transform_indices = @transform_1, window_bounds = array<i64: 128, 512>}, {pipeline_mode = #tpu.pipeline_mode<synchronous>, transform_indices = @transform_2, window_bounds = array<i64: 1, 512>}, {pipeline_mode = #tpu.pipeline_mode<synchronous>, transform_indices = @transform_3, window_bounds = array<i64: 512, 128>}, {pipeline_mode = #tpu.pipeline_mode<synchronous>, transform_indices = @transform_4, window_bounds = array<i64: 1, 128>}, {pipeline_mode = #tpu.pipeline_mode<synchronous>, transform_indices = @transform_5, window_bounds = array<i64: 1, 128>}, {pipeline_mode = #tpu.pipeline_mode<synchronous>, transform_indices = @transform_6, window_bounds = array<i64: 1, 128>}, {transform_indices = @transform_7, window_bounds = array<i64: 16, 128>}]} {
    %c0 = arith.constant 0 : index
    %c0_0 = arith.constant 0 : index
    %0 = vector.load %arg1[%c0, %c0_0] : memref<16x128xf32, #tpu.memory_space<vmem>>, vector<16x128xf32>
    %c0_1 = arith.constant 0 : index
    %c0_2 = arith.constant 0 : index
    %1 = vector.load %arg2[%c0_1, %c0_2] : memref<128x512xf32, #tpu.memory_space<vmem>>, vector<128x512xf32>
    %cst = arith.constant dense<0.000000e+00> : vector<16x512xf32>
    %2 = tpu.matmul %0, %1, %cst {dimension_numbers = #tpu.dot_dimension_numbers<[1], [0], [0], [1], [0, 0, 1, 1], [], []>} : vector<16x128xf32>, vector<128x512xf32>, vector<16x512xf32> -> vector<16x512xf32>
    %c0_3 = arith.constant 0 : index
    %c0_4 = arith.constant 0 : index
    %3 = vector.load %arg3[%c0_3, %c0_4] : memref<1x512xf32, #tpu.memory_space<vmem>>, vector<1x512xf32>
    %4 = vector.broadcast %3 : vector<1x512xf32> to vector<16x512xf32>
    %5 = arith.addf %2, %4 : vector<16x512xf32>
    %cst_5 = arith.constant 0.000000e+00 : f32
    %6 = vector.broadcast %cst_5 : f32 to vector<16x512xf32>
    %7 = arith.maximumf %5, %6 : vector<16x512xf32>
    %c0_6 = arith.constant 0 : index
    %c0_7 = arith.constant 0 : index
    %8 = vector.load %arg4[%c0_6, %c0_7] : memref<512x128xf32, #tpu.memory_space<vmem>>, vector<512x128xf32>
    %cst_8 = arith.constant dense<0.000000e+00> : vector<16x128xf32>
    %9 = tpu.matmul %7, %8, %cst_8 {dimension_numbers = #tpu.dot_dimension_numbers<[1], [0], [0], [1], [0, 0, 1, 1], [], []>} : vector<16x512xf32>, vector<512x128xf32>, vector<16x128xf32> -> vector<16x128xf32>
    %c0_9 = arith.constant 0 : index
    %c0_10 = arith.constant 0 : index
    %10 = vector.load %arg5[%c0_9, %c0_10] : memref<1x128xf32, #tpu.memory_space<vmem>>, vector<1x128xf32>
    %11 = vector.broadcast %10 : vector<1x128xf32> to vector<16x128xf32>
    %12 = arith.addf %9, %11 : vector<16x128xf32>
    %13 = arith.addf %12, %0 : vector<16x128xf32>
    %cst_11 = arith.constant dense<0.000000e+00> : vector<16xf32>
    %14 = vector.multi_reduction <add>, %13, %cst_11 [1] : vector<16x128xf32> to vector<16xf32>
    %15 = vector.shape_cast %14 : vector<16xf32> to vector<16x1xf32>
    %cst_12 = arith.constant 1.280000e+02 : f32
    %16 = vector.broadcast %cst_12 : f32 to vector<16x1xf32>
    %17 = arith.divf %15, %16 : vector<16x1xf32>
    %18 = vector.broadcast %17 : vector<16x1xf32> to vector<16x128xf32>
    %19 = arith.subf %13, %18 : vector<16x128xf32>
    %20 = arith.mulf %19, %19 : vector<16x128xf32>
    %cst_13 = arith.constant dense<0.000000e+00> : vector<16xf32>
    %21 = vector.multi_reduction <add>, %20, %cst_13 [1] : vector<16x128xf32> to vector<16xf32>
    %22 = vector.shape_cast %21 : vector<16xf32> to vector<16x1xf32>
    %cst_14 = arith.constant 1.280000e+02 : f32
    %23 = vector.broadcast %cst_14 : f32 to vector<16x1xf32>
    %24 = arith.divf %22, %23 : vector<16x1xf32>
    %cst_15 = arith.constant 9.99999996E-13 : f32
    %25 = vector.broadcast %cst_15 : f32 to vector<16x1xf32>
    %26 = arith.addf %24, %25 : vector<16x1xf32>
    %27 = math.rsqrt %26 : vector<16x1xf32>
    %c0_16 = arith.constant 0 : index
    %c0_17 = arith.constant 0 : index
    %28 = vector.load %arg6[%c0_16, %c0_17] : memref<1x128xf32, #tpu.memory_space<vmem>>, vector<1x128xf32>
    %29 = vector.broadcast %27 : vector<16x1xf32> to vector<16x128xf32>
    %30 = arith.mulf %19, %29 : vector<16x128xf32>
    %31 = vector.broadcast %28 : vector<1x128xf32> to vector<16x128xf32>
    %32 = arith.mulf %31, %30 : vector<16x128xf32>
    %c0_18 = arith.constant 0 : index
    %c0_19 = arith.constant 0 : index
    %33 = vector.load %arg7[%c0_18, %c0_19] : memref<1x128xf32, #tpu.memory_space<vmem>>, vector<1x128xf32>
    %34 = vector.broadcast %33 : vector<1x128xf32> to vector<16x128xf32>
    %35 = arith.addf %32, %34 : vector<16x128xf32>
    %c0_20 = arith.constant 0 : index
    %c0_21 = arith.constant 0 : index
    %36 = vector.load %arg8[%c0_20, %c0_21] : memref<16x128xf32, #tpu.memory_space<vmem>>, vector<16x128xf32>
    tpu.vector_store %arg8[%c0_20, %c0_21], %35 {strides = array<i32>} : memref<16x128xf32, #tpu.memory_space<vmem>>, vector<16x128xf32>,
    return
  }
  func.func @transform_0(%arg0: i32) -> (i32, i32) {
    %c0_i32 = arith.constant 0 : i32
    %c0_i32_0 = arith.constant 0 : i32
    return %arg0, %c0_i32 : i32, i32
  }
  func.func @transform_1(%arg0: i32) -> (i32, i32) {
    %c0_i32 = arith.constant 0 : i32
    %c0_i32_0 = arith.constant 0 : i32
    %c0_i32_1 = arith.constant 0 : i32
    return %c0_i32, %c0_i32_0 : i32, i32
  }
  func.func @transform_2(%arg0: i32) -> (i32, i32) {
    %c0_i32 = arith.constant 0 : i32
    %c0_i32_0 = arith.constant 0 : i32
    %c0_i32_1 = arith.constant 0 : i32
    return %c0_i32, %c0_i32_0 : i32, i32
  }
  func.func @transform_3(%arg0: i32) -> (i32, i32) {
    %c0_i32 = arith.constant 0 : i32
    %c0_i32_0 = arith.constant 0 : i32
    %c0_i32_1 = arith.constant 0 : i32
    return %c0_i32, %c0_i32_0 : i32, i32
  }
  func.func @transform_4(%arg0: i32) -> (i32, i32) {
    %c0_i32 = arith.constant 0 : i32
    %c0_i32_0 = arith.constant 0 : i32
    %c0_i32_1 = arith.constant 0 : i32
    return %c0_i32, %c0_i32_0 : i32, i32
  }
  func.func @transform_5(%arg0: i32) -> (i32, i32) {
    %c0_i32 = arith.constant 0 : i32
    %c0_i32_0 = arith.constant 0 : i32
    %c0_i32_1 = arith.constant 0 : i32
    return %c0_i32, %c0_i32_0 : i32, i32
  }
  func.func @transform_6(%arg0: i32) -> (i32, i32) {
    %c0_i32 = arith.constant 0 : i32
    %c0_i32_0 = arith.constant 0 : i32
    %c0_i32_1 = arith.constant 0 : i32
    return %c0_i32, %c0_i32_0 : i32, i32
  }
  func.func @transform_7(%arg0: i32) -> (i32, i32) {
    %c0_i32 = arith.constant 0 : i32
    %c0_i32_0 = arith.constant 0 : i32
    return %arg0, %c0_i32 : i32, i32
  }
}

</mosaic_0001>

<bundles_post_ra>
// kernel: tpu_custom_call.1
= control target key start
LH: loop header
LB: loop body
LE: loop exit
PB: predicated region body
PF: predicated region fallthrough
CT: control target
= control target key end

     0   :  { %12 = vsyncpa [#allocation3], 0  ;;  %s1232_s0 = inlined_call_operand.hbm [shape: f32[16,128], index: 0, kind: input, shape index: {}]   ;;  %s1233_s1 = inlined_call_operand.hbm [shape: f32[128,512], index: 1, kind: input, shape index: {}]   ;;  %s1234_s2 = inlined_call_operand.hbm [shape: f32[1,512], index: 2, kind: input, shape index: {}]   ;;  %s1235_s3 = inlined_call_operand.hbm [shape: f32[512,128], index: 3, kind: input, shape index: {}]   ;;  %s1236_s4 = inlined_call_operand.hbm [shape: f32[1,128], index: 4, kind: input, shape index: {}]   ;;  %s1237_s5 = inlined_call_operand.hbm [shape: f32[1,128], index: 5, kind: input, shape index: {}]   ;;  %s1238_s6 = inlined_call_operand.hbm [shape: f32[1,128], index: 6, kind: input, shape index: {}]   ;;  %s1239_s7 = inlined_call_operand.hbm [shape: f32[16,128], index: 7, kind: output, shape index: {}]  }
   0x1   :  { %13 = vsyncpa [#allocation6], 0 }
   0x2   :  { %14 = vsyncpa [#allocation9], 0 }
   0x3   :  { %15 = vsyncpa [#allocation12], 0 }
   0x4   :  { %16 = vsyncpa [#allocation4], 0  ;;  %s1060_s24 = smov [#allocation5]   ;;  %s874_s28 = scalar_lea.hbm %s1233_s1, 8192 }
   0x5   :  { %s34_s25 = sshll.u32 %s1060_s24, 4  ;;  %p875_p0 = scmp.ne.s32.totalorder %s1233_s1, %s874_s28  ;;  %s35_s25 = int_to_ptr.vmem [resolvable:$true] %s34_s25 }
   0x6   :  { %p878_p1 = scmp.lt.u32.totalorder %s874_s28, %s1233_s1 }
   0x8   :  { %p880_p2 = pnand %p878_p1, %p875_p0 }
   0xa   :  { %883 = shalt.err (!%p880_p2)
}
   0xb   :  { %s884_s10 = scalar_lea.vmem %s35_s25, 8192  ;;  %p889_p4 = scmp.lt.s32.totalorder %s35_s25, %s35_s25 }
   0xc   :  { %p885_p3 = scmp.ne.s32.totalorder %s35_s25, %s884_s10  ;;  %p890_p5 = scmp.lt.s32.totalorder %s884_s10, %s884_s10 }
   0xe   :  { %p891_p6 = por %p890_p5, %p889_p4 }
  0x10   :  { %p892_p7 = pnand %p891_p6, %p885_p3 }
  0x12   :  { %895 = shalt.err (!%p892_p7)
}
  0x13   :  { %s1061_s11 = smov 512   ;;  %s1062_s12 = smov 32  }
  0x14   :  { %40 = dma.hbm_to_vmem [thread:$0]  %s1233_s1, 8192, %s35_s25, [#allocation6], %s1061_s11, %s1061_s11, %s1062_s12  }
  0x15   :  { %s1063_s15 = smov [#allocation8]   ;;  %s1064_s17 = smov [#allocation11]  }
  0x16   :  { %s56_s16 = sshll.u32 %s1063_s15, 4  ;;  %s79_s18 = sshll.u32 %s1064_s17, 4  ;;  %s57_s16 = int_to_ptr.vmem [resolvable:$true] %s56_s16  ;;  %s80_s18 = int_to_ptr.vmem [resolvable:$true] %s79_s18 }
  0x17   :  { %s896_s21 = scalar_lea.hbm %s1235_s3, 8192 }
  0x18   :  { %p897_p8 = scmp.ne.s32.totalorder %s1235_s3, %s896_s21  ;;  %p900_p9 = scmp.lt.u32.totalorder %s896_s21, %s1235_s3 }
  0x1a   :  { %p902_p10 = pnand %p900_p9, %p897_p8 }
  0x1c   :  { %905 = shalt.err (!%p902_p10)
}
  0x1d   :  { %s906_s1 = scalar_lea.vmem %s57_s16, 8192  ;;  %p911_p12 = scmp.lt.s32.totalorder %s57_s16, %s57_s16 }
  0x1e   :  { %p907_p11 = scmp.ne.s32.totalorder %s57_s16, %s906_s1  ;;  %p912_p13 = scmp.lt.s32.totalorder %s906_s1, %s906_s1 }
  0x20   :  { %p913_p0 = por %p912_p13, %p911_p12 }
  0x22   :  { %p914_p1 = pnand %p913_p0, %p907_p11 }
  0x24   :  { %917 = shalt.err (!%p914_p1)
}
  0x25   :  { %s1065_s25 = smov 128   ;;  %s1066_s27 = smov 8  }
  0x26   :  { %62 = dma.hbm_to_vmem [thread:$0]  %s1235_s3, 8192, %s57_s16, [#allocation9], %s1065_s25, %s1065_s25, %s1066_s27  }
  0x27   :  { %s918_s9 = scalar_lea.hbm %s1237_s5, 16 }
  0x28   :  { %p919_p2 = scmp.ne.s32.totalorder %s1237_s5, %s918_s9  ;;  %p922_p3 = scmp.lt.u32.totalorder %s918_s9, %s1237_s5 }
  0x2a   :  { %p924_p4 = pnand %p922_p3, %p919_p2 }
  0x2c   :  { %927 = shalt.err (!%p924_p4)
}
  0x2d   :  { %s928_s14 = scalar_lea.vmem %s80_s18, 16  ;;  %s932_s15 = scalar_lea.vmem %s80_s18, 32 }
  0x2e   :  { %p929_p5 = scmp.ne.s32.totalorder %s80_s18, %s928_s14  ;;  %p933_p6 = scmp.lt.s32.totalorder %s80_s18, %s80_s18 }
  0x2f   :  { %p934_p7 = scmp.lt.s32.totalorder %s932_s15, %s928_s14 }
  0x31   :  { %p935_p8 = por %p934_p7, %p933_p6 }
  0x33   :  { %p936_p9 = pnand %p935_p8, %p929_p5 }
  0x35   :  { %939 = shalt.err (!%p936_p9)
}
  0x36   :  { %82 = dma.hbm_to_vmem [thread:$0]  %s1237_s5, 16, %s80_s18, [#allocation12]  }
  0x37   :  { %s1067_s17 = smov [#allocation2]   ;;  %s1068_s20 = smov [#allocation7]  }
  0x38   :  { %s22_s19 = sshll.u32 %s1067_s17, 4  ;;  %s47_s21 = sshll.u32 %s1068_s20, 4  ;;  %s23_s19 = int_to_ptr.vmem [resolvable:$true] %s22_s19  ;;  %s48_s21 = int_to_ptr.vmem [resolvable:$true] %s47_s21 }
  0x39   :  { %s940_s24 = scalar_lea.hbm %s1232_s0, 256 }
  0x3a   :  { %p941_p10 = scmp.ne.s32.totalorder %s1232_s0, %s940_s24  ;;  %p944_p11 = scmp.lt.u32.totalorder %s940_s24, %s1232_s0 }
  0x3c   :  { %p946_p12 = pnand %p944_p11, %p941_p10 }
  0x3e   :  { %949 = shalt.err (!%p946_p12)
}
  0x3f   :  { %s950_s5 = scalar_lea.vmem %s23_s19, 256  ;;  %p955_p0 = scmp.lt.s32.totalorder %s23_s19, %s23_s19 }
  0x40   :  { %p951_p13 = scmp.ne.s32.totalorder %s23_s19, %s950_s5  ;;  %p956_p1 = scmp.lt.s32.totalorder %s950_s5, %s950_s5 }
  0x42   :  { %p957_p2 = por %p956_p1, %p955_p0 }
  0x44   :  { %p958_p3 = pnand %p957_p2, %p951_p13 }
  0x46   :  { %961 = shalt.err (!%p958_p3)
}
  0x47   :  { %28 = dma.hbm_to_vmem [thread:$0]  %s1232_s0, 256, %s23_s19, [#allocation3], %s1065_s25, %s1065_s25, %s1066_s27  }
  0x48   :  { %s962_s10 = scalar_lea.hbm %s1234_s2, 64 }
  0x49   :  { %p963_p4 = scmp.ne.s32.totalorder %s1234_s2, %s962_s10  ;;  %p966_p5 = scmp.lt.u32.totalorder %s962_s10, %s1234_s2 }
  0x4b   :  { %p968_p6 = pnand %p966_p5, %p963_p4 }
  0x4d   :  { %971 = shalt.err (!%p968_p6)
}
  0x4e   :  { %s972_s15 = scalar_lea.vmem %s48_s21, 64  ;;  %p977_p8 = scmp.lt.s32.totalorder %s48_s21, %s48_s21 }
  0x4f   :  { %p973_p7 = scmp.ne.s32.totalorder %s48_s21, %s972_s15  ;;  %p978_p9 = scmp.lt.s32.totalorder %s972_s15, %s972_s15 }
  0x51   :  { %p979_p10 = por %p978_p9, %p977_p8 }
  0x53   :  { %p980_p11 = pnand %p979_p10, %p973_p7 }
  0x55   :  { %983 = shalt.err (!%p980_p11)
}
  0x56   :  { %50 = dma.hbm_to_vmem [thread:$0]  %s1234_s2, 64, %s48_s21, [#allocation6]  }
  0x57   :  { %s1069_s16 = smov [#allocation10]   ;;  %s1070_s19 = smov [#allocation13]  }
  0x58   :  { %s69_s17 = sshll.u32 %s1069_s16, 4  ;;  %s89_s20 = sshll.u32 %s1070_s19, 4  ;;  %s70_s17 = int_to_ptr.vmem [resolvable:$true] %s69_s17  ;;  %s90_s20 = int_to_ptr.vmem [resolvable:$true] %s89_s20 }
  0x59   :  { %s984_s24 = scalar_lea.hbm %s1236_s4, 16 }
  0x5a   :  { %p985_p12 = scmp.ne.s32.totalorder %s1236_s4, %s984_s24  ;;  %p988_p13 = scmp.lt.u32.totalorder %s984_s24, %s1236_s4 }
  0x5c   :  { %p990_p0 = pnand %p988_p13, %p985_p12 }
  0x5e   :  { %993 = shalt.err (!%p990_p0)
}
  0x5f   :  { %s994_s2 = scalar_lea.vmem %s70_s17, 16  ;;  %s998_s21 = scalar_lea.vmem %s70_s17, 32 }
  0x60   :  { %p995_p1 = scmp.ne.s32.totalorder %s70_s17, %s994_s2  ;;  %p999_p2 = scmp.lt.s32.totalorder %s70_s17, %s70_s17 }
  0x61   :  { %p1000_p3 = scmp.lt.s32.totalorder %s998_s21, %s994_s2 }
  0x63   :  { %p1001_p4 = por %p1000_p3, %p999_p2 }
  0x65   :  { %p1002_p5 = pnand %p1001_p4, %p995_p1 }
  0x67   :  { %1005 = shalt.err (!%p1002_p5)
}
  0x68   :  { %72 = dma.hbm_to_vmem [thread:$0]  %s1236_s4, 16, %s70_s17, [#allocation9]  }
  0x69   :  { %s1006_s9 = scalar_lea.hbm %s1238_s6, 16 }
  0x6a   :  { %p1007_p6 = scmp.ne.s32.totalorder %s1238_s6, %s1006_s9  ;;  %p1010_p7 = scmp.lt.u32.totalorder %s1006_s9, %s1238_s6 }
  0x6c   :  { %p1012_p8 = pnand %p1010_p7, %p1007_p6 }
  0x6e   :  { %1015 = shalt.err (!%p1012_p8)
}
  0x6f   :  { %s1016_s14 = scalar_lea.vmem %s90_s20, 16  ;;  %s1020_s15 = scalar_lea.vmem %s90_s20, 32 }
  0x70   :  { %p1017_p9 = scmp.ne.s32.totalorder %s90_s20, %s1016_s14  ;;  %p1021_p10 = scmp.lt.s32.totalorder %s90_s20, %s90_s20 }
  0x71   :  { %p1022_p11 = scmp.lt.s32.totalorder %s1020_s15, %s1016_s14 }
  0x73   :  { %p1023_p12 = por %p1022_p11, %p1021_p10 }
  0x75   :  { %p1024_p13 = pnand %p1023_p12, %p1017_p9 }
  0x77   :  { %1027 = shalt.err (!%p1024_p13)
}
  0x78   :  { %92 = dma.hbm_to_vmem [thread:$0]  %s1238_s6, 16, %s90_s20, [#allocation12]  }
  0x79   :  { %1050 = dma.done.wait [#allocation3], 256  }
  0x7a   :  { %1051 = vsyncadd [#allocation3], 4294967040 }
  0x7b   :  { %1052 = dma.done.wait [#allocation6], 8256  }
  0x7c   :  { %1053 = vsyncadd [#allocation6], 4294959040 }
  0x7d   :  { %1054 = dma.done.wait [#allocation9], 8208  }
  0x7e   :  { %1055 = vsyncadd [#allocation9], 4294959088 }
  0x7f   :  { %1056 = dma.done.wait [#allocation12], 32  }
  0x80   :  { %1057 = vsyncadd [#allocation12], 4294967264  ;;  %v1071_v0 = vmov 0.0   ;;  %v117_v1 = vld [vmem:[#allocation5 + $0x8] sm:$0xff]  ;;  %v119_v3 = vld [vmem:[#allocation5 + $0x18] sm:$0xff]  ;;  %s1072_s6 = smov [#allocation14]  }
  0x81   :  { %266 = vmatprep.mubr.f32.mxu0 %v1071_v0  ;;  %343 = vmatprep.mubr.f32.mxu1 %v1071_v0  ;;  %v121_v2 = vld [vmem:[#allocation5 + $0x28] sm:$0xff]  ;;  %v123_v5 = vld [vmem:[#allocation5 + $0x38] sm:$0xff]  ;;  %v116_v6 = vld [vmem:[#allocation5] sm:$0xff]  ;;  %s635_s3 = sshll.u32 %s1072_s6, 4  ;;  %s636_s3 = int_to_ptr.vmem [resolvable:$true] %s635_s3 }
  0x82   :  { %v729_v4 = vpack.c.bf16 %v121_v2, %v117_v1  ;;  %v120_v7 = vld [vmem:[#allocation5 + $0x20] sm:$0xff]  ;;  %v761_v8 = vpack.c.bf16 %v123_v5, %v119_v3  ;;  %v118_v10 = vld [vmem:[#allocation5 + $0x10] sm:$0xff]  ;;  %v125_v12 = vld [vmem:[#allocation5 + $0x48] sm:$0xff]  ;;  %s1028_s16 = scalar_lea.vmem %s636_s3, 256  ;;  %p1033_p1 = scmp.lt.s32.totalorder %s636_s3, %s636_s3 }
  0x83   :  { %v731_v9 = vpack.c.bf16 %v120_v7, %v116_v6  ;;  %v122_v11 = vld [vmem:[#allocation5 + $0x30] sm:$0xff]  ;;  %v129_v14 = vld [vmem:[#allocation5 + $0x68] sm:$0xff]  ;;  %v127_v15 = vld [vmem:[#allocation5 + $0x58] sm:$0xff]  ;;  %p1029_p0 = scmp.ne.s32.totalorder %s636_s3, %s1028_s16  ;;  %p1034_p2 = scmp.lt.s32.totalorder %s1028_s16, %s1028_s16 }
  0x84   :  { %730 = vmatprep.subr.bf16.mxu0 %v729_v4  ;;  %v763_v13 = vpack.c.bf16 %v122_v11, %v118_v10  ;;  %v131_v16 = vld [vmem:[#allocation5 + $0x78] sm:$0xff]  ;;  %762 = vmatprep.subr.bf16.mxu1 %v761_v8  ;;  %v733_v17 = vpack.c.bf16 %v129_v14, %v125_v12  ;;  %v124_v19 = vld [vmem:[#allocation5 + $0x40] sm:$0xff]  ;;  %v126_v21 = vld [vmem:[#allocation5 + $0x50] sm:$0xff] }
  0x85   :  { %732 = vmatpush1.bf16.msra.mxu0 %v731_v9  ;;  %v765_v18 = vpack.c.bf16 %v131_v16, %v127_v15  ;;  %v128_v20 = vld [vmem:[#allocation5 + $0x60] sm:$0xff]  ;;  %v130_v23 = vld [vmem:[#allocation5 + $0x70] sm:$0xff]  ;;  %v133_v24 = vld [vmem:[#allocation5 + $0x88] sm:$0xff]  ;;  %p1035_p3 = por %p1034_p2, %p1033_p1 }
  0x86   :  { %764 = vmatpush1.bf16.msra.mxu1 %v763_v13  ;;  %v735_v22 = vpack.c.bf16 %v128_v20, %v124_v19  ;;  %v137_v25 = vld [vmem:[#allocation5 + $0xa8] sm:$0xff]  ;;  %734 = vmatprep.subr.bf16.mxu0 %v733_v17  ;;  %v767_v26 = vpack.c.bf16 %v130_v23, %v126_v21  ;;  %v135_v28 = vld [vmem:[#allocation5 + $0x98] sm:$0xff]  ;;  %v132_v30 = vld [vmem:[#allocation5 + $0x80] sm:$0xff] }
  0x87   :  { %766 = vmatprep.subr.bf16.mxu1 %v765_v18  ;;  %v737_v27 = vpack.c.bf16 %v137_v25, %v133_v24  ;;  %v139_v29 = vld [vmem:[#allocation5 + $0xb8] sm:$0xff]  ;;  %v136_v32 = vld [vmem:[#allocation5 + $0xa0] sm:$0xff]  ;;  %v134_v33 = vld [vmem:[#allocation5 + $0x90] sm:$0xff]  ;;  %p1036_p4 = pnand %p1035_p3, %p1029_p0 }
  0x88   :  { %v769_v31 = vpack.c.bf16 %v139_v29, %v135_v28  ;;  %v138_v34 = vld [vmem:[#allocation5 + $0xb0] sm:$0xff]  ;;  %v739_v35 = vpack.c.bf16 %v136_v32, %v132_v30  ;;  %v141_v36 = vld [vmem:[#allocation5 + $0xc8] sm:$0xff]  ;;  %v143_v38 = vld [vmem:[#allocation5 + $0xd8] sm:$0xff] }
  0x89   :  { %736 = vmatpush1.bf16.msra.mxu0 %v735_v22  ;;  %v145_v37 = vld [vmem:[#allocation5 + $0xe8] sm:$0xff]  ;;  %v771_v39 = vpack.c.bf16 %v138_v34, %v134_v33  ;;  %v147_v41 = vld [vmem:[#allocation5 + $0xf8] sm:$0xff]  ;;  %v140_v42 = vld [vmem:[#allocation5 + $0xc0] sm:$0xff] }
  0x8a   :  { %768 = vmatpush1.bf16.msra.mxu1 %v767_v26  ;;  %738 = vmatprep.subr.bf16.mxu0 %v737_v27  ;;  %v741_v40 = vpack.c.bf16 %v145_v37, %v141_v36  ;;  %v144_v43 = vld [vmem:[#allocation5 + $0xe0] sm:$0xff]  ;;  %v773_v44 = vpack.c.bf16 %v147_v41, %v143_v38  ;;  %v142_v45 = vld [vmem:[#allocation5 + $0xd0] sm:$0xff]  ;;  %v149_v47 = vld [vmem:[#allocation5 + $0x108] sm:$0xff] }
  0x8b   :  { %770 = vmatprep.subr.bf16.mxu1 %v769_v31  ;;  %v146_v46 = vld [vmem:[#allocation5 + $0xf0] sm:$0xff]  ;;  %v153_v48 = vld [vmem:[#allocation5 + $0x128] sm:$0xff]  ;;  %v151_v49 = vld [vmem:[#allocation5 + $0x118] sm:$0xff]  ;;  %v743_v51 = vpack.c.bf16 %v144_v43, %v140_v42 }
  0x8c   :  { %v155_v50 = vld [vmem:[#allocation5 + $0x138] sm:$0xff]  ;;  %v775_v52 = vpack.c.bf16 %v146_v46, %v142_v45  ;;  %v745_v53 = vpack.c.bf16 %v153_v48, %v149_v47  ;;  %v148_v54 = vld [vmem:[#allocation5 + $0x100] sm:$0xff]  ;;  %v150_v56 = vld [vmem:[#allocation5 + $0x110] sm:$0xff] }
  0x8d   :  { %740 = vmatpush1.bf16.msra.mxu0 %v739_v35  ;;  %v152_v55 = vld [vmem:[#allocation5 + $0x120] sm:$0xff]  ;;  %v777_v57 = vpack.c.bf16 %v155_v50, %v151_v49  ;;  %v154_v58 = vld [vmem:[#allocation5 + $0x130] sm:$0xff]  ;;  %v157_v59 = vld [vmem:[#allocation5 + $0x148] sm:$0xff] }
  0x8e   :  { %772 = vmatpush1.bf16.msra.mxu1 %v771_v39  ;;  %742 = vmatprep.subr.bf16.mxu0 %v741_v40  ;;  %v161_v60 = vld [vmem:[#allocation5 + $0x168] sm:$0xff]  ;;  %v159_v61 = vld [vmem:[#allocation5 + $0x158] sm:$0xff]  ;;  %v747_v63 = vpack.c.bf16 %v152_v55, %v148_v54  ;;  %v779_v1 = vpack.c.bf16 %v154_v58, %v150_v56  ;;  %v156_v3 = vld [vmem:[#allocation5 + $0x140] sm:$0xff] }
  0x8f   :  { %774 = vmatprep.subr.bf16.mxu1 %v773_v44  ;;  %v163_v62 = vld [vmem:[#allocation5 + $0x178] sm:$0xff]  ;;  %v749_v2 = vpack.c.bf16 %v161_v60, %v157_v59  ;;  %v160_v4 = vld [vmem:[#allocation5 + $0x160] sm:$0xff]  ;;  %v158_v5 = vld [vmem:[#allocation5 + $0x150] sm:$0xff] }
  0x90   :  { %v781_v6 = vpack.c.bf16 %v163_v62, %v159_v61  ;;  %v162_v7 = vld [vmem:[#allocation5 + $0x170] sm:$0xff]  ;;  %v165_v8 = vld [vmem:[#allocation5 + $0x188] sm:$0xff]  ;;  %v167_v10 = vld [vmem:[#allocation5 + $0x198] sm:$0xff]  ;;  %v751_v12 = vpack.c.bf16 %v160_v4, %v156_v3 }
  0x91   :  { %744 = vmatpush1.bf16.msra.mxu0 %v743_v51  ;;  %v169_v9 = vld [vmem:[#allocation5 + $0x1a8] sm:$0xff]  ;;  %v171_v11 = vld [vmem:[#allocation5 + $0x1b8] sm:$0xff]  ;;  %v783_v13 = vpack.c.bf16 %v162_v7, %v158_v5  ;;  %v164_v15 = vld [vmem:[#allocation5 + $0x180] sm:$0xff] }
  0x92   :  { %776 = vmatpush1.bf16.msra.mxu1 %v775_v52  ;;  %746 = vmatprep.subr.bf16.mxu0 %v745_v53  ;;  %v753_v14 = vpack.c.bf16 %v169_v9, %v165_v8  ;;  %v168_v16 = vld [vmem:[#allocation5 + $0x1a0] sm:$0xff]  ;;  %v166_v17 = vld [vmem:[#allocation5 + $0x190] sm:$0xff]  ;;  %v785_v18 = vpack.c.bf16 %v171_v11, %v167_v10  ;;  %v173_v20 = vld [vmem:[#allocation5 + $0x1c8] sm:$0xff] }
  0x93   :  { %778 = vmatprep.subr.bf16.mxu1 %v777_v57  ;;  %v170_v19 = vld [vmem:[#allocation5 + $0x1b0] sm:$0xff]  ;;  %v177_v21 = vld [vmem:[#allocation5 + $0x1e8] sm:$0xff]  ;;  %v175_v22 = vld [vmem:[#allocation5 + $0x1d8] sm:$0xff]  ;;  %v755_v24 = vpack.c.bf16 %v168_v16, %v164_v15 }
  0x94   :  { %v179_v23 = vld [vmem:[#allocation5 + $0x1f8] sm:$0xff]  ;;  %v787_v25 = vpack.c.bf16 %v170_v19, %v166_v17  ;;  %v757_v26 = vpack.c.bf16 %v177_v21, %v173_v20  ;;  %v172_v27 = vld [vmem:[#allocation5 + $0x1c0] sm:$0xff]  ;;  %v174_v29 = vld [vmem:[#allocation5 + $0x1d0] sm:$0xff] }
  0x95   :  { %748 = vmatpush1.bf16.msra.mxu0 %v747_v63  ;;  %v176_v28 = vld [vmem:[#allocation5 + $0x1e0] sm:$0xff]  ;;  %v789_v30 = vpack.c.bf16 %v179_v23, %v175_v22  ;;  %v178_v31 = vld [vmem:[#allocation5 + $0x1f0] sm:$0xff]  ;;  %v1210_v59 = vld [vmem:[#allocation2 + $0x8] sm:$0xff] }
  0x96   :  { %780 = vmatpush1.bf16.msra.mxu1 %v779_v1  ;;  %750 = vmatprep.subr.bf16.mxu0 %v749_v2  ;;  %v380_v32 = vld [vmem:[#allocation8 + $0x80] sm:$0xff]  ;;  %v381_v33 = vld [vmem:[#allocation8 + $0x88] sm:$0xff]  ;;  %v759_v36 = vpack.c.bf16 %v176_v28, %v172_v27  ;;  %v791_v37 = vpack.c.bf16 %v178_v31, %v174_v29  ;;  %v382_v44 = vld [vmem:[#allocation8 + $0x90] sm:$0xff] }
  0x97   :  { %782 = vmatprep.subr.bf16.mxu1 %v781_v6  ;;  %v412_v34 = vld [vmem:[#allocation8 + $0x180] sm:$0xff]  ;;  %v413_v35 = vld [vmem:[#allocation8 + $0x188] sm:$0xff]  ;;  %v793_v38 = vpack.c.bf16 %v381_v33, %v380_v32  ;;  %v383_v45 = vld [vmem:[#allocation8 + $0x98] sm:$0xff] }
  0x98   :  { %v825_v39 = vpack.c.bf16 %v413_v35, %v412_v34  ;;  %v364_v40 = vld [vmem:[#allocation8] sm:$0xff]  ;;  %v365_v41 = vld [vmem:[#allocation8 + $0x8] sm:$0xff]  ;;  %v414_v47 = vld [vmem:[#allocation8 + $0x190] sm:$0xff]  ;;  %v797_v51 = vpack.c.bf16 %v383_v45, %v382_v44 }
  0x99   :  { %752 = vmatpush1.bf16.msra.mxu0 %v751_v12  ;;  %v396_v42 = vld [vmem:[#allocation8 + $0x100] sm:$0xff]  ;;  %v397_v43 = vld [vmem:[#allocation8 + $0x108] sm:$0xff]  ;;  %v415_v48 = vld [vmem:[#allocation8 + $0x198] sm:$0xff]  ;;  %v795_v49 = vpack.c.bf16 %v365_v41, %v364_v40 }
  0x9a   :  { %784 = vmatpush1.bf16.msra.mxu1 %v783_v13  ;;  %754 = vmatprep.subr.bf16.mxu0 %v753_v14  ;;  %v1205_v46 = vld [vmem:[#allocation2] sm:$0xff]  ;;  %v827_v50 = vpack.c.bf16 %v397_v43, %v396_v42  ;;  %v367_v53 = vld [vmem:[#allocation8 + $0x18] sm:$0xff]  ;;  %v829_v55 = vpack.c.bf16 %v415_v48, %v414_v47  ;;  %v384_v57 = vld [vmem:[#allocation8 + $0xa0] sm:$0xff] }
  0x9b   :  { %786 = vmatprep.subr.bf16.mxu1 %v785_v18  ;;  %v366_v52 = vld [vmem:[#allocation8 + $0x10] sm:$0xff]  ;;  %v399_v56 = vld [vmem:[#allocation8 + $0x118] sm:$0xff]  ;;  %v385_v58 = vld [vmem:[#allocation8 + $0xa8] sm:$0xff] }
  0x9c   :  { %v398_v54 = vld [vmem:[#allocation8 + $0x110] sm:$0xff]  ;;  %v416_v60 = vld [vmem:[#allocation8 + $0x1a0] sm:$0xff]  ;;  %v417_v61 = vld [vmem:[#allocation8 + $0x1a8] sm:$0xff]  ;;  %v799_v62 = vpack.c.bf16 %v367_v53, %v366_v52  ;;  %v801_v1 = vpack.c.bf16 %v385_v58, %v384_v57 }
  0x9d   :  { %756 = vmatpush1.bf16.msra.mxu0 %v755_v24  ;;  %v831_v63 = vpack.c.bf16 %v399_v56, %v398_v54  ;;  %v368_v2 = vld [vmem:[#allocation8 + $0x20] sm:$0xff]  ;;  %v369_v3 = vld [vmem:[#allocation8 + $0x28] sm:$0xff]  ;;  %v833_v5 = vpack.c.bf16 %v417_v61, %v416_v60  ;;  %v386_v7 = vld [vmem:[#allocation8 + $0xb0] sm:$0xff] }
  0x9e   :  { %788 = vmatpush1.bf16.msra.mxu1 %v787_v25  ;;  %758 = vmatprep.subr.bf16.mxu0 %v757_v26  ;;  %v400_v4 = vld [vmem:[#allocation8 + $0x120] sm:$0xff]  ;;  %v401_v6 = vld [vmem:[#allocation8 + $0x128] sm:$0xff]  ;;  %v387_v8 = vld [vmem:[#allocation8 + $0xb8] sm:$0xff]  ;;  %v803_v10 = vpack.c.bf16 %v369_v3, %v368_v2 }
  0x9f   :  { %790 = vmatprep.subr.bf16.mxu1 %v789_v30  ;;  %v418_v9 = vld [vmem:[#allocation8 + $0x1b0] sm:$0xff]  ;;  %v835_v11 = vpack.c.bf16 %v401_v6, %v400_v4  ;;  %v805_v12 = vpack.c.bf16 %v387_v8, %v386_v7  ;;  %v371_v14 = vld [vmem:[#allocation8 + $0x38] sm:$0xff]  ;;  %v388_v18 = vld [vmem:[#allocation8 + $0xc0] sm:$0xff]  ;;  %v182_v7 = vlaneseq }
  0xa0   :  { %v370_v13 = vld [vmem:[#allocation8 + $0x30] sm:$0xff]  ;;  %v403_v17 = vld [vmem:[#allocation8 + $0x138] sm:$0xff]  ;;  %v389_v19 = vld [vmem:[#allocation8 + $0xc8] sm:$0xff] }
  0xa1   :  { %760 = vmatpush1.bf16.msra.mxu0 %v759_v36  ;;  %v402_v15 = vld [vmem:[#allocation8 + $0x130] sm:$0xff]  ;;  %v420_v20 = vld [vmem:[#allocation8 + $0x1c0] sm:$0xff]  ;;  %v421_v21 = vld [vmem:[#allocation8 + $0x1c8] sm:$0xff]  ;;  %v807_v22 = vpack.c.bf16 %v371_v14, %v370_v13  ;;  %v809_v24 = vpack.c.bf16 %v389_v19, %v388_v18  ;;  %v183_v8 = vshrl.u32 %v182_v7, 7 }
  0xa2   :  { %792 = vmatpush1.bf16.msra.mxu1 %v791_v37  ;;  %794 = vmatprep.subr.bf16.mxu0 %v793_v38  ;;  %v839_v23 = vpack.c.bf16 %v403_v17, %v402_v15  ;;  %v372_v25 = vld [vmem:[#allocation8 + $0x40] sm:$0xff]  ;;  %v373_v26 = vld [vmem:[#allocation8 + $0x48] sm:$0xff]  ;;  %v841_v28 = vpack.c.bf16 %v421_v21, %v420_v20  ;;  %v390_v30 = vld [vmem:[#allocation8 + $0xd0] sm:$0xff] }
  0xa3   :  { %826 = vmatprep.subr.bf16.mxu1 %v825_v39  ;;  %v404_v27 = vld [vmem:[#allocation8 + $0x140] sm:$0xff]  ;;  %v405_v29 = vld [vmem:[#allocation8 + $0x148] sm:$0xff]  ;;  %v391_v31 = vld [vmem:[#allocation8 + $0xd8] sm:$0xff]  ;;  %v811_v34 = vpack.c.bf16 %v373_v26, %v372_v25 }
  0xa4   :  { %267 = vmatmul.mubr.f32.vlgmr.msra.gmra.mrb[0].mxu0 %v1205_v46  ;;  %v422_v32 = vld [vmem:[#allocation8 + $0x1d0] sm:$0xff]  ;;  %v423_v33 = vld [vmem:[#allocation8 + $0x1d8] sm:$0xff]  ;;  %v843_v35 = vpack.c.bf16 %v405_v29, %v404_v27  ;;  %v813_v36 = vpack.c.bf16 %v391_v31, %v390_v30  ;;  %v392_v42 = vld [vmem:[#allocation8 + $0xe0] sm:$0xff] }
  0xa5   :  { %344 = vmatmul.mubr.f32.vlgmr.msra.gmra.mrb[0].mxu1 %v1205_v46  ;;  %272 = vmatprep.mubr.f32.mxu0 %v1071_v0  ;;  %v374_v37 = vld [vmem:[#allocation8 + $0x50] sm:$0xff]  ;;  %v375_v38 = vld [vmem:[#allocation8 + $0x58] sm:$0xff]  ;;  %v845_v40 = vpack.c.bf16 %v423_v33, %v422_v32  ;;  %v393_v43 = vld [vmem:[#allocation8 + $0xe8] sm:$0xff] }
  0xa6   :  { %349 = vmatprep.mubr.f32.mxu1 %v1071_v0  ;;  %796 = vmatpush3.bf16.msra.mxu0 %v795_v49  ;;  %v419_v0 = vld [vmem:[#allocation8 + $0x1b8] sm:$0xff]  ;;  %v406_v39 = vld [vmem:[#allocation8 + $0x150] sm:$0xff]  ;;  %v424_v44 = vld [vmem:[#allocation8 + $0x1e0] sm:$0xff]  ;;  %v815_v47 = vpack.c.bf16 %v375_v38, %v374_v37  ;;  %v817_v49 = vpack.c.bf16 %v393_v43, %v392_v42 }
  0xa7   :  { %828 = vmatpush3.bf16.msra.mxu1 %v827_v50  ;;  %798 = vmatprep.subr.bf16.mxu0 %v797_v51  ;;  %v837_v16 = vpack.c.bf16 %v419_v0, %v418_v9  ;;  %v407_v41 = vld [vmem:[#allocation8 + $0x158] sm:$0xff]  ;;  %v425_v45 = vld [vmem:[#allocation8 + $0x1e8] sm:$0xff]  ;;  %v376_v51 = vld [vmem:[#allocation8 + $0x60] sm:$0xff]  ;;  %v184_v9 = vsub.s32 0, %v183_v8 }
  0xa8   :  { %273 = vmatmul.mubr.f32.gmra.mrb[2].mxu0 %v1210_v59  ;;  %830 = vmatprep.subr.bf16.mxu1 %v829_v55  ;;  %v847_v48 = vpack.c.bf16 %v407_v41, %v406_v39  ;;  %v849_v50 = vpack.c.bf16 %v425_v45, %v424_v44  ;;  %v377_v52 = vld [vmem:[#allocation8 + $0x68] sm:$0xff]  ;;  %v408_v53 = vld [vmem:[#allocation8 + $0x160] sm:$0xff]  ;;  %v394_v57 = vld [vmem:[#allocation8 + $0xf0] sm:$0xff] }
  0xa9   :  { %350 = vmatmul.mubr.f32.gmra.mrb[2].mxu1 %v1210_v59  ;;  %v819_v54 = vpack.c.bf16 %v377_v52, %v376_v51  ;;  %v409_v55 = vld [vmem:[#allocation8 + $0x168] sm:$0xff]  ;;  %v395_v58 = vld [vmem:[#allocation8 + $0xf8] sm:$0xff]  ;;  %v426_v60 = vld [vmem:[#allocation8 + $0x1f0] sm:$0xff] }
  0xaa   :  { %800 = vmatpush3.bf16.msra.mxu0 %v799_v62  ;;  %v851_v56 = vpack.c.bf16 %v409_v55, %v408_v53  ;;  %v821_v61 = vpack.c.bf16 %v395_v58, %v394_v57  ;;  %v427_v62 = vld [vmem:[#allocation8 + $0x1f8] sm:$0xff]  ;;  %v410_v4 = vld [vmem:[#allocation8 + $0x170] sm:$0xff]  ;;  %v650_v43 = vld [vmem:[#allocation10] ss:$0 sm:$0xff] }
  0xab   :  { %832 = vmatpush3.bf16.msra.mxu1 %v831_v63  ;;  %802 = vmatprep.subr.bf16.mxu0 %v801_v1  ;;  %v378_v63 = vld [vmem:[#allocation8 + $0x70] sm:$0xff]  ;;  %v379_v1 = vld [vmem:[#allocation8 + $0x78] sm:$0xff]  ;;  %v853_v2 = vpack.c.bf16 %v427_v62, %v426_v60 }
  0xac   :  { %834 = vmatprep.subr.bf16.mxu1 %v833_v5  ;;  %v823_v3 = vpack.c.bf16 %v379_v1, %v378_v63  ;;  %v411_v5 = vld [vmem:[#allocation8 + $0x178] sm:$0xff] }
  0xad   :  { %v855_v6 = vpack.c.bf16 %v411_v5, %v410_v4  ;;  %v180_v0 = vld [vmem:[#allocation7] sm:$0xf] }
  0xae   :  { %804 = vmatpush3.bf16.msra.mxu0 %v803_v10  ;;  %v192_v10 = vsub.s32 2, %v183_v8  ;;  %v185_v13 = vrot.slane %v180_v0, %v184_v9 }
  0xaf   :  { %836 = vmatpush3.bf16.msra.mxu1 %v835_v11  ;;  %806 = vmatprep.subr.bf16.mxu0 %v805_v12  ;;  %v188_v11 = vsub.s32 1, %v183_v8  ;;  %v196_v12 = vsub.s32 3, %v183_v8 }
  0xb0   :  { %838 = vmatprep.subr.bf16.mxu1 %v837_v16  ;;  %v193_v14 = vrot.slane %v180_v0, %v192_v10 }
  0xb1   :  { %v189_v15 = vrot.slane %v180_v0, %v188_v11  ;;  %v197_v16 = vrot.slane %v180_v0, %v196_v12  ;;  %v651_v11 = vld [vmem:[#allocation11] ss:$0 sm:$0xff] }
  0xb2   :  { %808 = vmatpush3.bf16.msra.mxu0 %v807_v22 }
  0xb3   :  { %840 = vmatpush3.bf16.msra.mxu1 %v839_v23  ;;  %810 = vmatprep.subr.bf16.mxu0 %v809_v24 }
  0xb4   :  { %842 = vmatprep.subr.bf16.mxu1 %v841_v28 }
  0xb6   :  { %812 = vmatpush3.bf16.msra.mxu0 %v811_v34 }
  0xb7   :  { %844 = vmatpush3.bf16.msra.mxu1 %v843_v35  ;;  %814 = vmatprep.subr.bf16.mxu0 %v813_v36 }
  0xb8   :  { %846 = vmatprep.subr.bf16.mxu1 %v845_v40 }
  0xba   :  { %816 = vmatpush3.bf16.msra.mxu0 %v815_v47 }
  0xbb   :  { %848 = vmatpush3.bf16.msra.mxu1 %v847_v48  ;;  %818 = vmatprep.subr.bf16.mxu0 %v817_v49 }
  0xbc   :  { %850 = vmatprep.subr.bf16.mxu1 %v849_v50 }
  0xbe   :  { %820 = vmatpush3.bf16.msra.mxu0 %v819_v54 }
  0xbf   :  { %852 = vmatpush3.bf16.msra.mxu1 %v851_v56  ;;  %822 = vmatprep.subr.bf16.mxu0 %v821_v61 }
  0xc0   :  { %854 = vmatprep.subr.bf16.mxu1 %v853_v2 }
  0xc2   :  { %824 = vmatpush3.bf16.msra.mxu0 %v823_v3 }
  0xc3   :  { %856 = vmatpush3.bf16.msra.mxu1 %v855_v6 }
 0x177   :  { %v268_v17 = vpop.f32.mrb[0].mxu0 }
 0x178   :  { %v269_v18 = vadd.f32 %v268_v17, %v185_v13  ;;  %v345_v19 = vpop.f32.mrb[0].mxu1  ;;  %v270_v20 = vpop.f32.mrb[1].mxu0 }
 0x179   :  { %v346_v21 = vadd.f32 %v345_v19, %v193_v14  ;;  %v271_v22 = vadd.f32 %v270_v20, %v189_v15  ;;  %v347_v23 = vpop.f32.mrb[1].mxu1 }
 0x17a   :  { %v348_v24 = vadd.f32 %v347_v23, %v197_v16  ;;  %v356_v28 = vmax.f32 %v269_v18, 0.0 }
 0x17b   :  { %v358_v25 = vmax.f32 %v346_v21, 0.0  ;;  %v357_v26 = vmax.f32 %v271_v22, 0.0  ;;  %v274_v27 = vpop.f32.mrb[2].mxu0 }
 0x17c   :  { %v359_v29 = vmax.f32 %v348_v24, 0.0  ;;  %v275_v30 = vadd.f32 %v274_v27, %v185_v13  ;;  %v351_v31 = vpop.f32.mrb[2].mxu1  ;;  %v276_v32 = vpop.f32.mrb[3].mxu0  ;;  %v652_v13 = vld [vmem:[#allocation13] ss:$0 sm:$0xff] }
 0x17d   :  { %v352_v33 = vadd.f32 %v351_v31, %v193_v14  ;;  %v277_v34 = vadd.f32 %v276_v32, %v189_v15  ;;  %v353_v35 = vpop.f32.mrb[3].mxu1  ;;  %499 = vmatprep.mubr.f32.mxu0 %v357_v26 }
 0x17e   :  { %v354_v36 = vadd.f32 %v353_v35, %v197_v16  ;;  %574 = vmatprep.mubr.f32.mxu1 %v359_v29  ;;  %500 = vmatmul.mubr.f32.vlgmr.msra.gmra.mrb[4].mxu0 %v356_v28  ;;  %v360_v39 = vmax.f32 %v275_v30, 0.0 }
 0x17f   :  { %v362_v37 = vmax.f32 %v352_v33, 0.0  ;;  %v361_v38 = vmax.f32 %v277_v34, 0.0  ;;  %575 = vmatmul.mubr.f32.vlgmr.msra.gmra.mrb[4].mxu1 %v358_v25 }
 0x180   :  { %v363_v40 = vmax.f32 %v354_v36, 0.0 }
 0x181   :  { %504 = vmatprep.mubr.f32.mxu0 %v361_v38 }
 0x182   :  { %579 = vmatprep.mubr.f32.mxu1 %v363_v40  ;;  %505 = vmatmul.mubr.f32.gmra.mrb[6].mxu0 %v360_v39 }
 0x183   :  { %580 = vmatmul.mubr.f32.gmra.mrb[6].mxu1 %v362_v37 }
 0x251   :  { %v685_v41 = vpop.f32.mrb[4].mxu0 }
 0x252   :  { %v723_v42 = vpop.f32.mrb[4].mxu1  ;;  %v686_v44 = vpop.f32.mrb[5].mxu0 }
 0x253   :  { %v687_v45 = vadd.f32 %v686_v44, %v685_v41  ;;  %v724_v47 = vpop.f32.mrb[5].mxu1 }
 0x254   :  { %v725_v48 = vadd.f32 %v724_v47, %v723_v42 }
 0x255   :  { %v502_v49 = vadd.f32 %v687_v45, %v650_v43  ;;  %v688_v50 = vpop.f32.mrb[6].mxu0 }
 0x256   :  { %v726_v51 = vpop.f32.mrb[6].mxu1  ;;  %v689_v52 = vpop.f32.mrb[7].mxu0 }
 0x257   :  { %v577_v53 = vadd.f32 %v725_v48, %v502_v49  ;;  %v690_v54 = vadd.f32 %v689_v52, %v688_v50  ;;  %v727_v55 = vpop.f32.mrb[7].mxu1 }
 0x258   :  { %v728_v56 = vadd.f32 %v727_v55, %v726_v51 }
 0x259   :  { %v507_v57 = vadd.f32 %v690_v54, %v650_v43  ;;  %v585_v58 = vadd.f32 %v577_v53, %v1205_v46 }
 0x25b   :  { %v582_v60 = vadd.f32 %v728_v56, %v507_v57  ;;  %587 = vadd.xlane.f32.xlu0 %v585_v58 }
 0x25d   :  { %v586_v61 = vadd.f32 %v582_v60, %v1210_v59 }
 0x25f   :  { %589 = vadd.xlane.f32.xlu0 %v586_v61 }
 0x2e8   :  { %v588_v62 = vpop.xlane.xlu0 %587 }
 0x2e9   :  { %v592_v63 = vmul.f32 0.0078125, %v588_v62 }
 0x2eb   :  { %v594_v1 = vsub.f32 %v585_v58, %v592_v63 }
 0x2ec   :  { %v590_v2 = vpop.xlane.xlu0 %589 }
 0x2ed   :  { %v593_v3 = vmul.f32 0.0078125, %v590_v2  ;;  %v596_v4 = vmul.f32 %v594_v1, %v594_v1 }
 0x2ef   :  { %v595_v5 = vsub.f32 %v586_v61, %v593_v3  ;;  %598 = vadd.xlane.f32.xlu1 %v596_v4 }
 0x2f1   :  { %v597_v6 = vmul.f32 %v595_v5, %v595_v5 }
 0x2f3   :  { %600 = vadd.xlane.f32.xlu1 %v597_v6 }
 0x37c   :  { %v599_v7 = vpop.xlane.xlu1 %598 }
 0x37d   :  { %v602_v8 = vmul.f32 0.0078125, %v599_v7 }
 0x37f   :  { %v604_v9 = vadd.f32 1e-12, %v602_v8 }
 0x380   :  { %v601_v0 = vpop.xlane.xlu1 %600 }
 0x381   :  { %870 = vrsqrt.f32 %v604_v9  ;;  %v603_v46 = vmul.f32 0.0078125, %v601_v0 }
 0x383   :  { %v605_v10 = vadd.f32 1e-12, %v603_v46 }
 0x385   :  { %872 = vrsqrt.f32 %v605_v10 }
 0x38b   :  { %v871_v59 = vpop.eup %870 }
 0x38c   :  { %v609_v12 = vmul.f32 %v871_v59, %v594_v1 }
 0x38e   :  { %v617_v14 = vmul.f32 %v651_v11, %v609_v12 }
 0x38f   :  { %v873_v15 = vpop.eup %872 }
 0x390   :  { %v610_v16 = vmul.f32 %v873_v15, %v595_v5  ;;  %v626_v17 = vadd.f32 %v652_v13, %v617_v14 }
 0x392   :  { %v618_v18 = vmul.f32 %v651_v11, %v610_v16  ;;  %628 = vst [vmem:[#allocation14] sm:$0xff] %v626_v17 }
 0x394   :  { %v627_v19 = vadd.f32 %v652_v13, %v618_v18 }
 0x396   :  { %629 = vst [vmem:[#allocation14 + $0x8] sm:$0xff] %v627_v19 }
 0x397   :  { %1039 = shalt.err (!%p1036_p4)
}
 0x398   :  { %s1040_s20 = scalar_lea.hbm %s1239_s7, 256 }
 0x399   :  { %p1041_p5 = scmp.ne.s32.totalorder %s1239_s7, %s1040_s20  ;;  %p1044_p6 = scmp.lt.u32.totalorder %s1040_s20, %s1239_s7 }
 0x39b   :  { %p1046_p7 = pnand %p1044_p6, %p1041_p5 }
 0x39d   :  { %1049 = shalt.err (!%p1046_p7)
}
 0x39e   :  { %641 = dma.vmem_to_hbm [thread:$0]  %s636_s3, 256, %s1239_s7, [#allocation4], %s1065_s25, %s1065_s25, %s1066_s27  }
 0x39f   :  { %1058 = dma.done.wait [#allocation4], 256  }
 0x3a0   :  { %1059 = vsyncadd [#allocation4], 4294967040 }
 0x3a1   :  { %645 = vsyncpa [#allocation3], 1 }
 0x3a2   :  { %646 = vsyncpa [#allocation6], 1 }
 0x3a3   :  { %647 = vsyncpa [#allocation9], 1 }
 0x3a4   :  { %648 = vsyncpa [#allocation12], 1 }
 0x3a5   :  { %649 = vsyncpa [#allocation4], 1 }

</bundles_post_ra>
